<compile_context>
chip_gen: v7x
topology: tpu7x:2x2x1
jax: 0.10.0
libtpu: 0.0.40
codegen_flags: <defaults>
</compile_context>

<pallas_src>
import functools

import jax
import jax.numpy as jnp
from jax import lax
from jax.experimental import pallas as pl
from jax.experimental.pallas import tpu as pltpu


def _wsdice_sums_kernel(x_ref, t_ref, out_ref, *, tn, n_classes, s_valid,
                        s_pad, n_inner, v1, v2):
    o = pl.program_id(1)
    j = pl.program_id(2)

    @pl.when(j == 0)
    def _():
        out_ref[...] = jnp.zeros_like(out_ref)

    x = x_ref[...].astype(jnp.float32)                       # (C, tn) logits
    # softmax over the channel (sublane) axis
    m = jnp.max(x, axis=0, keepdims=True)                    # (1, tn)
    e = jnp.exp(x - m)                                       # (C, tn)   EUP
    denom = jnp.sum(e, axis=0, keepdims=True)                # (1, tn)
    inv2 = 2.0 * pl.reciprocal(denom, approx=True)           # (1, tn)   EUP vrcp
    q = e * inv2 - 1.0                                       # (C, tn) = 2*p - 1

    labels = t_ref[...]                                      # (1, tn) int32
    cls = lax.broadcasted_iota(jnp.int32, (n_classes, tn), 0)
    match = labels == cls                                    # (C, tn) one-hot mask

    v1sq = v1 * v1
    v2sq = v2 * v2

    if s_pad != s_valid:
        # Padded lanes (only in the final spatial tile) must contribute zero.
        # Fold the mask into the "else" branch of the selects: (1, tn)-sized work.
        lane = lax.broadcasted_iota(jnp.int32, (1, tn), 1)
        pos = (o * n_inner + j) * tn + lane
        valid = pos < s_valid                                # (1, tn) bool
        neg_else = jnp.where(valid, -v1sq, 0.0)              # (1, tn)
        pos_else = jnp.where(valid, v1sq, 0.0)               # (1, tn)
    else:
        neg_else = -v1sq
        pos_else = v1sq

    a_i = jnp.where(match, v2sq, neg_else)                   # w^2 * (2t - 1)
    a_z = jnp.where(match, v2sq, pos_else)                   # w^2

    # Per-tile lane reductions into the resident narrow (C, 3) output block.
    out_ref[:, 0:1] += jnp.sum(q * a_i, axis=-1, keepdims=True)        # intersect
    out_ref[:, 1:2] += jnp.sum(a_z, axis=-1, keepdims=True)            # y_sum
    out_ref[:, 2:3] += jnp.sum((q * q) * a_z, axis=-1, keepdims=True)  # z_sum


def wsdice_loss(inputs, target, n_classes, v1=0.85, v2=0.15, softmax=True,
                tn_max=8192):
    """inputs: (B, C, H, W) float logits; target: (B, H, W) int labels."""
    B, C, H, W = inputs.shape
    assert C == n_classes
    assert softmax  # softmax is applied inside the kernel
    S = H * W

    # NCHW kept as-is: contiguous (B, C, S) view, no HBM transpose.
    x = inputs.reshape(B, C, S)
    t = target.reshape(B, 1, S).astype(jnp.int32)

    # Pad only to a multiple of 512 lanes (no copy at all if S % 512 == 0).
    unit = 512
    s_pad = -(-S // unit) * unit
    if s_pad != S:
        x = jnp.pad(x, ((0, 0), (0, 0), (0, s_pad - S)))
        t = jnp.pad(t, ((0, 0), (0, 0), (0, s_pad - S)), constant_values=-1)

    # Tile: largest multiple of 512 that divides s_pad, capped by tn_max and a
    # C-scaled VMEM budget (double-buffered logits block <= ~2 MiB).
    cap = min(int(tn_max), max(unit, (2 * 1024 * 1024) // (4 * C)))
    cap = max(unit, (cap // unit) * unit)
    tn, tn_even = unit, None
    for cand in range(unit, cap + 1, unit):
        if s_pad % cand == 0:
            tn = cand
            if (s_pad // cand) % 2 == 0:
                tn_even = cand
    # v7x has 2 TensorCores; if B == 1, split the spatial reduction so the
    # "parallel" grid axes offer >= 2 blocks.
    n_outer = 1
    if B == 1 and tn_even is not None:
        tn = tn_even
        n_outer = 2
    n_tiles = s_pad // tn
    n_inner = n_tiles // n_outer

    kernel = functools.partial(
        _wsdice_sums_kernel, tn=tn, n_classes=C, s_valid=S, s_pad=s_pad,
        n_inner=n_inner, v1=float(v1), v2=float(v2))

    sums = pl.pallas_call(
        kernel,
        out_shape=jax.ShapeDtypeStruct((B, n_outer, C, 3), jnp.float32),
        grid_spec=pltpu.PrefetchScalarGridSpec(
            num_scalar_prefetch=0,
            grid=(B, n_outer, n_inner),
            in_specs=[
                pl.BlockSpec((None, C, tn),
                             lambda b, o, i: (b, 0, o * n_inner + i)),
                pl.BlockSpec((None, 1, tn),
                             lambda b, o, i: (b, 0, o * n_inner + i)),
            ],
            out_specs=pl.BlockSpec((None, None, C, 3),
                                   lambda b, o, i: (b, o, 0, 0)),
        ),
        compiler_params=pltpu.CompilerParams(
            dimension_semantics=("parallel", "parallel", "arbitrary")),
    )(x, t)

    # Global per-class sums over batch (and outer spatial chunks), then the
    # scalar dice combination.
    intersect = jnp.sum(sums[..., 0], axis=(0, 1))            # (C,)
    y_sum = jnp.sum(sums[..., 1], axis=(0, 1))                # (C,)
    z_sum = jnp.sum(sums[..., 2], axis=(0, 1))                # (C,)
    smooth = 1.0
    loss_per_class = 1.0 - (2.0 * intersect + smooth) / (z_sum + y_sum + smooth)
    return jnp.sum(loss_per_class) / n_classes


def wsdice_loss_ref(inputs, target, n_classes, v1=0.85, v2=0.15):
    """Pure-JAX reference mirroring the PyTorch module."""
    p = jax.nn.softmax(inputs, axis=1)                        # (B, C, H, W)
    onehot = (target[:, None, :, :] == jnp.arange(n_classes)[None, :, None, None])
    onehot = onehot.astype(jnp.float32)
    smooth = 1.0
    loss = 0.0
    for i in range(n_classes):
        score = p[:, i]
        tgt = onehot[:, i]
        w = tgt * (v2 - v1) + v1
        s = w * (2.0 * score - 1.0)
        tt = w * (2.0 * tgt - 1.0)
        intersect = jnp.sum(s * tt)
        y_sum = jnp.sum(tt * tt)
        z_sum = jnp.sum(s * s)
        loss += 1.0 - (2.0 * intersect + smooth) / (z_sum + y_sum + smooth)
    return loss / n_classes


if __name__ == "__main__":
    B, C, H, W = 2, 4, 16, 16
    key = jax.random.PRNGKey(0)
    k1, k2 = jax.random.split(key)
    inputs = jax.random.normal(k1, (B, C, H, W), dtype=jnp.float32)
    target = jax.random.randint(k2, (B, H, W), 0, C, dtype=jnp.int32)

    out = wsdice_loss(inputs, target, n_classes=C)
    out = jax.block_until_ready(out)

    ref = wsdice_loss_ref(inputs, target, n_classes=C)
    # Tolerance loosened slightly for the approx (EUP) reciprocal in softmax.
    assert jnp.allclose(out, ref, atol=5e-3, rtol=5e-3), (out, ref)

    print("KERNEL_OK")
</pallas_src>

<mosaic_0001>
module attributes {stable_mosaic.version = 11 : i64} {
  func.func @_wsdice_sums_kernel(%arg0: i32, %arg1: i32, %arg2: i32, %arg3: memref<1x4x512xf32, #tpu.memory_space<vmem>>, %arg4: memref<1x1x512xi32, #tpu.memory_space<vmem>>, %arg5: memref<1x1x4x3xf32, #tpu.memory_space<vmem>>) attributes {dimension_semantics = [#tpu.dimension_semantics<parallel>, #tpu.dimension_semantics<parallel>, #tpu.dimension_semantics<arbitrary>], iteration_bounds = array<i64: 2, 1, 1>, scalar_prefetch = 0 : i64, scratch_operands = 0 : i64, tpu.core_type = #tpu.core_type<tc>, window_params = [{transform_indices = @transform_0, window_bounds = array<i64: 1, 4, 512>}, {transform_indices = @transform_1, window_bounds = array<i64: 1, 1, 512>}, {transform_indices = @transform_2, window_bounds = array<i64: 1, 1, 4, 3>}]} {
    %c0_i32 = arith.constant 0 : i32
    %0 = arith.cmpi eq, %arg2, %c0_i32 : i32
    %1 = arith.extui %0 : i1 to i32
    %c0_i32_0 = arith.constant 0 : i32
    %2 = arith.cmpi ne, %1, %c0_i32_0 : i32
    scf.if %2 {
      %cst_40 = arith.constant 0.000000e+00 : f32
      %73 = vector.broadcast %cst_40 : f32 to vector<4x3xf32>
      %c0_41 = arith.constant 0 : index
      %c0_42 = arith.constant 0 : index
      %c0_43 = arith.constant 0 : index
      %c0_44 = arith.constant 0 : index
      %74 = vector.load %arg5[%c0_41, %c0_42, %c0_43, %c0_44] : memref<1x1x4x3xf32, #tpu.memory_space<vmem>>, vector<1x1x4x3xf32>
      %75 = vector.shape_cast %74 : vector<1x1x4x3xf32> to vector<4x3xf32>
      %76 = vector.shape_cast %73 : vector<4x3xf32> to vector<1x1x4x3xf32>
      tpu.vector_store %arg5[%c0_41, %c0_42, %c0_43, %c0_44], %76 {strides = array<i32>} : memref<1x1x4x3xf32, #tpu.memory_space<vmem>>, vector<1x1x4x3xf32>,
    } else {
    }
    %c0 = arith.constant 0 : index
    %c0_1 = arith.constant 0 : index
    %c0_2 = arith.constant 0 : index
    %3 = vector.load %arg3[%c0, %c0_1, %c0_2] : memref<1x4x512xf32, #tpu.memory_space<vmem>>, vector<1x4x512xf32>
    %4 = vector.shape_cast %3 : vector<1x4x512xf32> to vector<4x512xf32>
    %cst = arith.constant dense<0xFF800000> : vector<512xf32>
    %5 = vector.multi_reduction <maximumf>, %4, %cst [0] : vector<4x512xf32> to vector<512xf32>
    %6 = vector.shape_cast %5 : vector<512xf32> to vector<1x512xf32>
    %7 = vector.broadcast %6 : vector<1x512xf32> to vector<4x512xf32>
    %8 = arith.subf %4, %7 : vector<4x512xf32>
    %9 = math.exp %8 : vector<4x512xf32>
    %cst_3 = arith.constant dense<0.000000e+00> : vector<512xf32>
    %10 = vector.multi_reduction <add>, %9, %cst_3 [0] : vector<4x512xf32> to vector<512xf32>
    %11 = vector.shape_cast %10 : vector<512xf32> to vector<1x512xf32>
    %12 = tpu.reciprocal %11 {approx = true} : vector<1x512xf32> -> vector<1x512xf32>
    %cst_4 = arith.constant 2.000000e+00 : f32
    %13 = vector.broadcast %cst_4 : f32 to vector<1x512xf32>
    %14 = arith.mulf %13, %12 : vector<1x512xf32>
    %15 = vector.broadcast %14 : vector<1x512xf32> to vector<4x512xf32>
    %16 = arith.mulf %9, %15 : vector<4x512xf32>
    %cst_5 = arith.constant 1.000000e+00 : f32
    %17 = vector.broadcast %cst_5 : f32 to vector<4x512xf32>
    %18 = arith.subf %16, %17 : vector<4x512xf32>
    %c0_6 = arith.constant 0 : index
    %c0_7 = arith.constant 0 : index
    %c0_8 = arith.constant 0 : index
    %19 = vector.load %arg4[%c0_6, %c0_7, %c0_8] : memref<1x1x512xi32, #tpu.memory_space<vmem>>, vector<1x1x512xi32>
    %20 = vector.shape_cast %19 : vector<1x1x512xi32> to vector<1x512xi32>
    %21 = tpu.iota {dimensions = array<i32: 0>} : vector<4x512xi32>
    %22 = vector.broadcast %20 : vector<1x512xi32> to vector<4x512xi32>
    %23 = arith.cmpi eq, %22, %21 : vector<4x512xi32>
    %24 = tpu.iota {dimensions = array<i32: 1>} : vector<1x512xi32>
    %c1_i32 = arith.constant 1 : i32
    %25 = arith.muli %arg1, %c1_i32 : i32
    %26 = arith.addi %25, %arg2 : i32
    %c512_i32 = arith.constant 512 : i32
    %27 = arith.muli %26, %c512_i32 : i32
    %28 = vector.broadcast %27 : i32 to vector<1x512xi32>
    %29 = arith.addi %28, %24 : vector<1x512xi32>
    %c256_i32 = arith.constant 256 : i32
    %30 = vector.broadcast %c256_i32 : i32 to vector<1x512xi32>
    %31 = arith.cmpi slt, %29, %30 : vector<1x512xi32>
    %cst_9 = arith.constant -7.225000e-01 : f32
    %cst_10 = arith.constant 0.000000e+00 : f32
    %32 = vector.broadcast %cst_9 : f32 to vector<1x512xf32>
    %33 = vector.broadcast %cst_10 : f32 to vector<1x512xf32>
    %34 = arith.select %31, %32, %33 : vector<1x512xi1>, vector<1x512xf32>
    %cst_11 = arith.constant 7.225000e-01 : f32
    %cst_12 = arith.constant 0.000000e+00 : f32
    %35 = vector.broadcast %cst_11 : f32 to vector<1x512xf32>
    %36 = vector.broadcast %cst_12 : f32 to vector<1x512xf32>
    %37 = arith.select %31, %35, %36 : vector<1x512xi1>, vector<1x512xf32>
    %cst_13 = arith.constant 2.250000e-02 : f32
    %38 = vector.broadcast %cst_13 : f32 to vector<4x512xf32>
    %39 = vector.shape_cast %34 : vector<1x512xf32> to vector<1x512xf32>
    %40 = vector.broadcast %39 : vector<1x512xf32> to vector<4x512xf32>
    %41 = arith.select %23, %38, %40 : vector<4x512xi1>, vector<4x512xf32>
    %cst_14 = arith.constant 2.250000e-02 : f32
    %42 = vector.broadcast %cst_14 : f32 to vector<4x512xf32>
    %43 = vector.shape_cast %37 : vector<1x512xf32> to vector<1x512xf32>
    %44 = vector.broadcast %43 : vector<1x512xf32> to vector<4x512xf32>
    %45 = arith.select %23, %42, %44 : vector<4x512xi1>, vector<4x512xf32>
    %c0_15 = arith.constant 0 : index
    %c0_16 = arith.constant 0 : index
    %c0_17 = arith.constant 0 : index
    %c0_18 = arith.constant 0 : index
    %46 = vector.load %arg5[%c0_15, %c0_16, %c0_17, %c0_18] : memref<1x1x4x3xf32, #tpu.memory_space<vmem>>, vector<1x1x4x1xf32>
    %47 = vector.shape_cast %46 : vector<1x1x4x1xf32> to vector<4x1xf32>
    %48 = arith.mulf %18, %41 : vector<4x512xf32>
    %cst_19 = arith.constant dense<0.000000e+00> : vector<4xf32>
    %49 = vector.multi_reduction <add>, %48, %cst_19 [1] : vector<4x512xf32> to vector<4xf32>
    %50 = vector.shape_cast %49 : vector<4xf32> to vector<4x1xf32>
    %51 = arith.addf %47, %50 : vector<4x1xf32>
    %c0_20 = arith.constant 0 : index
    %c0_21 = arith.constant 0 : index
    %c0_22 = arith.constant 0 : index
    %c0_23 = arith.constant 0 : index
    %52 = vector.load %arg5[%c0_20, %c0_21, %c0_22, %c0_23] : memref<1x1x4x3xf32, #tpu.memory_space<vmem>>, vector<1x1x4x1xf32>
    %53 = vector.shape_cast %52 : vector<1x1x4x1xf32> to vector<4x1xf32>
    %54 = vector.shape_cast %51 : vector<4x1xf32> to vector<1x1x4x1xf32>
    tpu.vector_store %arg5[%c0_20, %c0_21, %c0_22, %c0_23], %54 {strides = array<i32>} : memref<1x1x4x3xf32, #tpu.memory_space<vmem>>, vector<1x1x4x1xf32>,
    %c0_24 = arith.constant 0 : index
    %c0_25 = arith.constant 0 : index
    %c0_26 = arith.constant 0 : index
    %c1 = arith.constant 1 : index
    %55 = vector.load %arg5[%c0_24, %c0_25, %c0_26, %c1] : memref<1x1x4x3xf32, #tpu.memory_space<vmem>>, vector<1x1x4x1xf32>
    %56 = vector.shape_cast %55 : vector<1x1x4x1xf32> to vector<4x1xf32>
    %cst_27 = arith.constant dense<0.000000e+00> : vector<4xf32>
    %57 = vector.multi_reduction <add>, %45, %cst_27 [1] : vector<4x512xf32> to vector<4xf32>
    %58 = vector.shape_cast %57 : vector<4xf32> to vector<4x1xf32>
    %59 = arith.addf %56, %58 : vector<4x1xf32>
    %c0_28 = arith.constant 0 : index
    %c0_29 = arith.constant 0 : index
    %c0_30 = arith.constant 0 : index
    %c1_31 = arith.constant 1 : index
    %60 = vector.load %arg5[%c0_28, %c0_29, %c0_30, %c1_31] : memref<1x1x4x3xf32, #tpu.memory_space<vmem>>, vector<1x1x4x1xf32>
    %61 = vector.shape_cast %60 : vector<1x1x4x1xf32> to vector<4x1xf32>
    %62 = vector.shape_cast %59 : vector<4x1xf32> to vector<1x1x4x1xf32>
    tpu.vector_store %arg5[%c0_28, %c0_29, %c0_30, %c1_31], %62 {strides = array<i32>} : memref<1x1x4x3xf32, #tpu.memory_space<vmem>>, vector<1x1x4x1xf32>,
    %c0_32 = arith.constant 0 : index
    %c0_33 = arith.constant 0 : index
    %c0_34 = arith.constant 0 : index
    %c2 = arith.constant 2 : index
    %63 = vector.load %arg5[%c0_32, %c0_33, %c0_34, %c2] : memref<1x1x4x3xf32, #tpu.memory_space<vmem>>, vector<1x1x4x1xf32>
    %64 = vector.shape_cast %63 : vector<1x1x4x1xf32> to vector<4x1xf32>
    %65 = arith.mulf %18, %18 : vector<4x512xf32>
    %66 = arith.mulf %65, %45 : vector<4x512xf32>
    %cst_35 = arith.constant dense<0.000000e+00> : vector<4xf32>
    %67 = vector.multi_reduction <add>, %66, %cst_35 [1] : vector<4x512xf32> to vector<4xf32>
    %68 = vector.shape_cast %67 : vector<4xf32> to vector<4x1xf32>
    %69 = arith.addf %64, %68 : vector<4x1xf32>
    %c0_36 = arith.constant 0 : index
    %c0_37 = arith.constant 0 : index
    %c0_38 = arith.constant 0 : index
    %c2_39 = arith.constant 2 : index
    %70 = vector.load %arg5[%c0_36, %c0_37, %c0_38, %c2_39] : memref<1x1x4x3xf32, #tpu.memory_space<vmem>>, vector<1x1x4x1xf32>
    %71 = vector.shape_cast %70 : vector<1x1x4x1xf32> to vector<4x1xf32>
    %72 = vector.shape_cast %69 : vector<4x1xf32> to vector<1x1x4x1xf32>
    tpu.vector_store %arg5[%c0_36, %c0_37, %c0_38, %c2_39], %72 {strides = array<i32>} : memref<1x1x4x3xf32, #tpu.memory_space<vmem>>, vector<1x1x4x1xf32>,
    return
  }
  func.func @transform_0(%arg0: i32, %arg1: i32, %arg2: i32) -> (i32, i32, i32) {
    %c1_i32 = arith.constant 1 : i32
    %0 = arith.muli %arg1, %c1_i32 : i32
    %1 = arith.addi %0, %arg2 : i32
    %c0_i32 = arith.constant 0 : i32
    %c0_i32_0 = arith.constant 0 : i32
    return %arg0, %c0_i32, %1 : i32, i32, i32
  }
  func.func @transform_1(%arg0: i32, %arg1: i32, %arg2: i32) -> (i32, i32, i32) {
    %c1_i32 = arith.constant 1 : i32
    %0 = arith.muli %arg1, %c1_i32 : i32
    %1 = arith.addi %0, %arg2 : i32
    %c0_i32 = arith.constant 0 : i32
    %c0_i32_0 = arith.constant 0 : i32
    return %arg0, %c0_i32, %1 : i32, i32, i32
  }
  func.func @transform_2(%arg0: i32, %arg1: i32, %arg2: i32) -> (i32, i32, i32, i32) {
    %c0_i32 = arith.constant 0 : i32
    %c0_i32_0 = arith.constant 0 : i32
    %c0_i32_1 = arith.constant 0 : i32
    return %arg0, %arg1, %c0_i32, %c0_i32_0 : i32, i32, i32, i32
  }
}

</mosaic_0001>

<bundles_post_ra>
// kernel: tpu_custom_call.1
= control target key start
LH: loop header
LB: loop body
LE: loop exit
PB: predicated region body
PF: predicated region fallthrough
CT: control target
= control target key end

     0   :  { %7 = vsyncpa [#allocation3], 0  ;;  %s1049_s0 = inlined_call_operand.hbm [shape: f32[2,4,512], index: 0, kind: input, shape index: {}]   ;;  %s1050_s1 = inlined_call_operand.hbm [shape: s32[2,1,512], index: 1, kind: input, shape index: {}]   ;;  %s1051_s2 = inlined_call_operand.vmem [shape: f32[2,1,4,3], index: 2, kind: output, shape index: {}]  }
   0x1   :  { %9 = vsyncpa [#allocation3 + $0x1], 0 }
   0x2   :  { %10 = vsyncpa [#allocation5], 0 }
   0x3   :  { %12 = vsyncpa [#allocation5 + $0x1], 0  ;;  %s832_s9 = smov 0   ;;  %s834_s10 = smov 0  }
   0x4   :  { %s836_s11 = smov 0   ;;  %s838_s12 = smov 0  }
   0x5   :  { %s840_s13 = smov 0   ;;  %s842_s14 = smov 0  }
   0x6 LB: > { %s599_s15 = sadd.s32 4294967295, %s810_s14   ;;  %s37_s16 = sadd.s32 1, %s806_s13  ;;  %s810_s14 = sphi %s842_s14, %s18_s14   ;;  %s806_s13 = sphi %s840_s13, %s1065_s13   ;;  %s802_s12 = sphi %s838_s12, %s1064_s12   ;;  %s798_s11 = sphi %s836_s11, %s1063_s11   ;;  %s794_s10 = sphi %s834_s10, %s1062_s10   ;;  %s790_s9 = sphi %s832_s9, %s1061_s9  }
   0x7   : > { %p39_p0 = scmp.ge.s32.totalorder %s37_s16, 2  ;;  %s48_s17 = sadd.s32 1, %s798_s11 }
   0x8   : > { %p55_p1 = scmp.ne.s32.totalorder %s798_s11, %s794_s10  ;;  %p56_p2 = scmp.eq.s32.totalorder %s810_s14, 0 }
   0x9   : > { %s1067_s16 = smov (%p39_p0, %s37_s16), 0  ;;  %p61_p4 = scmp.ne.s32.totalorder %s794_s10, %s790_s9 }
   0xa   : > { %p868_p3 = por %p56_p2, %p55_p1  ;;  %s43_s19 = ssub.s32 %s806_s13, %s1067_s16 }
   0xb   : > { %p62_p5 = scmp.eq.s32.totalorder %s599_s15, 0  ;;  %p46_p6 = scmp.eq.s32.totalorder %s43_s19, 0 }
   0xc   : > { %p630_p8 = scmp.lt.s32.totalorder %s810_s14, 2  ;;  %s884_s22 = sand.u32 1, %s798_s11  }
   0xd   : > { %p875_p7 = por %p62_p5, %p61_p4  ;;  %s617_s23 = sshll.u32 %s806_s13, 8 }
   0xe   : > { %s881_s21 = scalar_select %p46_p6, %s798_s11, %s48_s17  }
   0xf   : > { %s1054_s20 = scalar_select %p875_p7, 1, 0 }
  0x10   : > { %s603_s24 = sshll.u32 %s884_s22, 4  ;;  %s891_s27 = scalar_lea.hbm %s1049_s0, %s617_s23 }
  0x11   : > { %s147_s28 = scalar_lea.vmem [#allocation2], %s603_s24  ;;  %p895_p9 = pnand %p630_p8, %p868_p3 }
  0x12   : > { %s158_s29 = sshll.u32 %s147_s28, 4  ;;  %s144_s3 = scalar_lea.sflag [#allocation3], %s884_s22  ;;  %s899_s29 = int_to_ptr.vmem [resolvable:$true] %s158_s29 }
  0x13   : > { %s696_s4 = scalar_lea.hbm %s891_s27, 256  ;;  %p698_p13 = pneg %p895_p9 }
  0x14   : > { %p697_p12 = scmp.ne.s32.totalorder %s891_s27, %s696_s4  ;;  %s701_s7 = scalar_lea.hbm %s1049_s0, 512 }
  0x15   : > { %p702_p2 = scmp.lt.u32.totalorder %s891_s27, %s1049_s0  ;;  %p703_p3 = scmp.lt.u32.totalorder %s701_s7, %s696_s4 }
  0x16   : > { %p699_p0 = pnand %p698_p13, %p697_p12  ;;  %p705_p5 = scmp.lt.u32.totalorder %s696_s4, %s891_s27 }
  0x17   : > { %p704_p4 = por %p703_p3, %p702_p2 }
  0x18   : > { %p700_p1 = pneg %p699_p0 }
  0x19   : > { %p706_p6 = por %p705_p5, %p704_p4 }
  0x1b   : > { %p707_p8 = pnand %p706_p6, %p700_p1 }
  0x1d   : > { %710 = shalt.err (!%p707_p8)
}
  0x1e   : > { %s711_s15 = scalar_lea.vmem %s899_s29, 256  ;;  %s812_s17 = smov [#allocation2]  }
  0x1f   : > { %p712_p12 = scmp.ne.s32.totalorder %s899_s29, %s711_s15  ;;  %s716_s18 = sshll.u32 %s812_s17, 4  ;;  %s717_s18 = int_to_ptr.vmem [resolvable:$false] %s716_s18 }
  0x20   : > { %s718_s19 = scalar_lea.vmem %s717_s18, 512  ;;  %p719_p11 = scmp.lt.s32.totalorder %s899_s29, %s717_s18 }
  0x21   : > { %p714_p0 = pnand %p712_p12, %p698_p13  ;;  %p720_p2 = scmp.lt.s32.totalorder %s718_s19, %s711_s15 }
  0x23   : > { %p715_p10 = pneg %p714_p0  ;;  %p721_p3 = por %p720_p2, %p719_p11 }
  0x25   : > { %p722_p4 = pnand %p721_p3, %p715_p10 }
  0x27   : > { %725 = shalt.err (!%p722_p4)
}
  0x28   : > { %626 = dma.hbm_to_vmem [thread:$0]  (!%p895_p9), %s891_s27, 256, %s899_s29, %s144_s3  }
  0x29   : > { %p1056_p1 = scmp.lt.s32.totalorder %s810_s14, 3  ;;  %p1057_p5 = scmp.ge.s32.totalorder %s810_s14, 1 }
  0x2a   : > { %s606_s24 = sshll.u32 %s884_s22, 2  ;;  %s618_s25 = sshll.u32 %s806_s13, 6 }
  0x2b   : > { %p933_p6 = pnand %p1057_p5, %p1056_p1  ;;  %s942_s4 = scalar_lea.hbm %s1050_s1, %s618_s25 }
  0x2c   : > { %s169_s5 = scalar_lea.vmem [#allocation4], %s606_s24  ;;  %s166_s27 = scalar_lea.sflag [#allocation5], %s884_s22 }
  0x2d   : > { %s1058_s23 = scalar_select %p933_p6, 1, 0 }
  0x2e   : > { %s180_s6 = sshll.u32 %s169_s5, 4  ;;  %s726_s29 = scalar_lea.hbm %s942_s4, 64  ;;  %s181_s6 = int_to_ptr.vmem [resolvable:$true] %s180_s6 }
  0x2f   : > { %p727_p10 = scmp.ne.s32.totalorder %s942_s4, %s726_s29  ;;  %s731_s8 = scalar_lea.hbm %s1050_s1, 128 }
  0x30   : > { %p732_p12 = scmp.lt.u32.totalorder %s942_s4, %s1050_s1  ;;  %p733_p0 = scmp.lt.u32.totalorder %s731_s8, %s726_s29 }
  0x31   : > { %p729_p11 = pnand %p727_p10, %p698_p13  ;;  %p735_p3 = scmp.lt.u32.totalorder %s726_s29, %s942_s4 }
  0x32   : > { %p734_p2 = por %p733_p0, %p732_p12 }
  0x33   : > { %p730_p8 = pneg %p729_p11 }
  0x34   : > { %p736_p4 = por %p735_p3, %p734_p2 }
  0x36   : > { %p737_p1 = pnand %p736_p4, %p730_p8 }
  0x38   : > { %740 = shalt.err (!%p737_p1)
}
  0x39   : > { %s741_s22 = scalar_lea.vmem %s181_s6, 64  ;;  %s813_s17 = smov [#allocation4]  }
  0x3a   : > { %p742_p5 = scmp.ne.s32.totalorder %s181_s6, %s741_s22  ;;  %s746_s18 = sshll.u32 %s813_s17, 4  ;;  %s747_s18 = int_to_ptr.vmem [resolvable:$false] %s746_s18 }
  0x3b   : > { %s748_s19 = scalar_lea.vmem %s747_s18, 128  ;;  %p749_p7 = scmp.lt.s32.totalorder %s181_s6, %s747_s18 }
  0x3c   : > { %p744_p10 = pnand %p742_p5, %p698_p13  ;;  %p750_p6 = scmp.lt.s32.totalorder %s748_s19, %s741_s22 }
  0x3e   : > { %p745_p11 = pneg %p744_p10  ;;  %p751_p0 = por %p750_p6, %p749_p7 }
  0x40   : > { %p752_p12 = pnand %p751_p0, %p745_p11 }
  0x42   : > { %755 = shalt.err (!%p752_p12)
}
  0x43   : > { %629 = dma.hbm_to_vmem [thread:$0]  (!%p895_p9), %s942_s4, 64, %s181_s6, %s166_s27  }
  0x44   : > { %p1059_p8 = scmp.ne.s32.totalorder %s1058_s23, 0 }
  0x45   : > { %s191_s24 = sand.u32 (!%p1059_p8), 1, %s794_s10   ;;  %p1060_p13 = scmp.ne.s32.totalorder (!%p1059_p8), %s1054_s20, 0 }
  0x46   : > { %189 = sbr.rel (%p1059_p8) target bundleno = 324 (0x144), region = 28  ;;  %s610_s25 = sshll.u32 (!%p1059_p8), %s191_s24, 4 }
  0x47   : > { %s192_s26 = scalar_lea.sflag (!%p1059_p8), [#allocation3], %s191_s24  ;;  %s195_s28 = scalar_lea.vmem (!%p1059_p8), [#allocation2], %s610_s25 }
  0x4d   : > { %781 = dma.done.wait (%p1060_p13), %s192_s26, 256  }
  0x4e   : > { %783 = vsyncadd (%p1060_p13), %s192_s26, 4294967040  ;;  %s611_s5 = sshll.u32 %s191_s24, 2  ;;  %s201_s29 = scalar_lea.sflag [#allocation5], %s191_s24 }
  0x4f   : > { %s971_s30 = scalar_lea.vmem [#allocation4], %s611_s5 }
  0x50   : > { %785 = dma.done.wait (%p1060_p13), %s201_s29, 64  }
  0x51   : > { %787 = vsyncadd (%p1060_p13), %s201_s29, 4294967232  ;;  %p236_p7 = scmp.lt.s32.totalorder %s802_s12, 1  ;;  %vm247_vm0 = vcmask 19456   ;;  %vm257_vm1 = vcmask 1043456   ;;  %v814_v0 = vmov 0.0   ;;  %v249_v1 = vld [vmem:[%s195_s28] sm:$0xff]  ;;  %v355_v61 = vlaneseq }
  0x52   : > { %v250_v2 = vld [vmem:[%s195_s28 + $0x8] sm:$0xff]  ;;  %v253_v3 = vcombine.high %v249_v1, %v249_v1  ;;  %v258_v5 = vsel %vm257_vm1, %v249_v1, -inf  ;;  %vm436_vm6 = vcmask 3072   ;;  %vm449_vm7 = vcmask 11272  }
  0x53   : > { %s1069_s12 = smov (!%p236_p7, %s802_s12), 1  ;;  %v254_v4 = vcombine.high %v250_v2, %v250_v2  ;;  %v272_v6 = vsel %vm257_vm1, %v250_v2, -inf  ;;  %v259_v7 = vrot.slane %v258_v5, 4  ;;  %vm480_vm8 = vcmask 19472  }
  0x54   : > { %s612_s23 = sshll.u32 %s1069_s12, 2  ;;  %v273_v8 = vrot.slane %v272_v6, 4  ;;  %v265_v9 = vsel %vm257_vm1, %v253_v3, -inf }
  0x55   : > { %s982_s27 = scalar_lea.vmem %s1051_s2, %s612_s23  ;;  %v279_v10 = vsel %vm257_vm1, %v254_v4, -inf  ;;  %v260_v11 = vmax.f32 %v258_v5, %v259_v7  ;;  %v266_v12 = vrot.slane %v265_v9, 4  ;;  %v356_v7 = vshrl.u32 %v355_v61, 7 }
  0x56   : > { %248 = vst.msk [vmem:[%s982_s27] sm:$0xf] %vm247_vm0, %v814_v0  ;;  %v274_v13 = vmax.f32 %v272_v6, %v273_v8  ;;  %v280_v14 = vrot.slane %v279_v10, 4 }
  0x57   : > { %v261_v15 = vrot.slane %v260_v11, 2  ;;  %v267_v16 = vmax.f32 %v265_v9, %v266_v12  ;;  %v354_v12 = vld [vmem:[%s971_s30] sm:$0xf] }
  0x58   : > { %v275_v17 = vrot.slane %v274_v13, 2  ;;  %v281_v18 = vmax.f32 %v279_v10, %v280_v14  ;;  %v359_v10 = vsub.s32 0, %v356_v7  ;;  %v371_v14 = vsub.s32 3, %v356_v7 }
  0x59   : > { %v262_v19 = vmax.f32 %v260_v11, %v261_v15  ;;  %v268_v20 = vrot.slane %v267_v16, 2  ;;  %v363_v11 = vsub.s32 1, %v356_v7 }
  0x5a   : > { %v276_v21 = vmax.f32 %v274_v13, %v275_v17  ;;  %v282_v22 = vrot.slane %v281_v18, 2  ;;  %v367_v13 = vsub.s32 2, %v356_v7  ;;  %v360_v15 = vrot.slane %v354_v12, %v359_v10 }
  0x5b   : > { %v263_v23 = vrot.slane %v262_v19, 1  ;;  %v269_v24 = vmax.f32 %v267_v16, %v268_v20  ;;  %v364_v16 = vrot.slane %v354_v12, %v363_v11 }
  0x5c   : > { %v277_v25 = vrot.slane %v276_v21, 1  ;;  %v283_v26 = vmax.f32 %v281_v18, %v282_v22  ;;  %v368_v17 = vrot.slane %v354_v12, %v367_v13  ;;  %v372_v18 = vrot.slane %v354_v12, %v371_v14 }
  0x5d   : > { %v264_v27 = vmax.f32 %v262_v19, %v263_v23  ;;  %v270_v28 = vrot.slane %v269_v24, 1  ;;  %vm373_vm2 = vcmp.eq.s32.totalorder %v360_v15, %v356_v7  ;;  %vm374_vm3 = vcmp.eq.s32.totalorder %v364_v16, %v356_v7  ;;  %v409_v11 = vld [vmem:[%s982_s27] sm:$0xf] }
  0x5e   : > { %v278_v29 = vmax.f32 %v276_v21, %v277_v25  ;;  %v284_v30 = vrot.slane %v283_v26, 1  ;;  %vm375_vm4 = vcmp.eq.s32.totalorder %v368_v17, %v356_v7  ;;  %vm376_vm5 = vcmp.eq.s32.totalorder %v372_v18, %v356_v7 }
  0x5f   : > { %v271_v31 = vmax.f32 %v269_v24, %v270_v28 }
  0x60   : > { %v285_v32 = vmax.f32 %v283_v26, %v284_v30 }
  0x61   : > { %v290_v33 = vcombine.low %v264_v27, %v271_v31  ;;  %v815_v27 = vmov -0.7225   ;;  %v403_v31 = vsel %vm375_vm4, 0.0225, %v814_v0 }
  0x62   : > { %v291_v34 = vcombine.low %v278_v29, %v285_v32  ;;  %v401_v28 = vsel %vm373_vm2, 0.0225, %v815_v27  ;;  %v402_v29 = vsel %vm374_vm3, 0.0225, %v815_v27  ;;  %v404_v32 = vsel %vm376_vm5, 0.0225, %v814_v0 }
  0x63   : > { %v294_v35 = vsub.f32 %v249_v1, %v290_v33 }
  0x64   : > { %v295_v36 = vsub.f32 %v250_v2, %v291_v34 }
  0x65   : > { %v296_v37 = vmul.f32 1.442695, %v294_v35  ;;  %v414_v35 = vcombine.low %v401_v28, %v402_v29 }
  0x66   : > { %v298_v38 = vmul.f32 1.442695, %v295_v36 }
  0x67   : > { %684 = vpow2.f32 %v296_v37  ;;  %v415_v37 = vcombine.low %v403_v31, %v404_v32 }
  0x68   : > { %686 = vpow2.f32 %v298_v38  ;;  %v816_v38 = vmov 0.7225  }
  0x71   : > { %v990_v39 = vpop.eup %684 }
  0x72   : > { %v992_v40 = vpop.eup %686  ;;  %v302_v41 = vcombine.high %v990_v39, %v990_v39  ;;  %v306_v42 = vsel %vm257_vm1, %v990_v39, 0.0 }
  0x73   : > { %v303_v43 = vcombine.high %v992_v40, %v992_v40  ;;  %v307_v44 = vrot.slane %v306_v42, 4  ;;  %v320_v45 = vsel %vm257_vm1, %v992_v40, 0.0 }
  0x74   : > { %v313_v46 = vsel %vm257_vm1, %v302_v41, 0.0  ;;  %v321_v47 = vrot.slane %v320_v45, 4  ;;  %v405_v41 = vsel %vm373_vm2, 0.0225, %v816_v38 }
  0x75   : > { %v308_v48 = vadd.f32 %v307_v44, %v306_v42  ;;  %v314_v49 = vrot.slane %v313_v46, 4  ;;  %v327_v50 = vsel %vm257_vm1, %v303_v43, 0.0  ;;  %v406_v42 = vsel %vm374_vm3, 0.0225, %v816_v38 }
  0x76   : > { %v322_v51 = vadd.f32 %v321_v47, %v320_v45  ;;  %v328_v52 = vrot.slane %v327_v50, 4  ;;  %v458_v44 = vcombine.low %v405_v41, %v406_v42  ;;  %v439_v47 = vsel %vm257_vm1, %v405_v41, 0.0 }
  0x77   : > { %v309_v53 = vrot.slane %v308_v48, 2  ;;  %v315_v54 = vadd.f32 %v314_v49, %v313_v46  ;;  %v440_v0 = vsel %vm257_vm1, %v406_v42, 0.0 }
  0x78   : > { %v323_v55 = vrot.slane %v322_v51, 2  ;;  %v329_v56 = vadd.f32 %v328_v52, %v327_v50 }
  0x79   : > { %v310_v57 = vadd.f32 %v309_v53, %v308_v48  ;;  %v316_v58 = vrot.slane %v315_v54, 2  ;;  %v441_v53 = vadd.f32 %v440_v0, %v439_v47 }
  0x7a   : > { %v324_v59 = vadd.f32 %v323_v55, %v322_v51  ;;  %v330_v60 = vrot.slane %v329_v56, 2 }
  0x7b   : > { %v311_v62 = vrot.slane %v310_v57, 1  ;;  %v317_v63 = vadd.f32 %v316_v58, %v315_v54  ;;  %v442_v54 = vsel %vm257_vm1, %v403_v31, 0.0 }
  0x7c   : > { %v325_v1 = vrot.slane %v324_v59, 1  ;;  %v331_v2 = vadd.f32 %v330_v60, %v329_v56 }
  0x7d   : > { %v312_v3 = vadd.f32 %v311_v62, %v310_v57  ;;  %v318_v4 = vrot.slane %v317_v63, 1 }
  0x7e   : > { %v326_v5 = vadd.f32 %v325_v1, %v324_v59  ;;  %v332_v6 = vrot.slane %v331_v2, 1 }
  0x7f   : > { %v319_v8 = vadd.f32 %v318_v4, %v317_v63  ;;  %688 = vrcp.f32 %v312_v3  ;;  %v443_v3 = vadd.f32 %v442_v54, %v441_v53 }
  0x80   : > { %v333_v9 = vadd.f32 %v332_v6, %v331_v2  ;;  %690 = vrcp.f32 %v326_v5  ;;  %v444_v5 = vsel %vm257_vm1, %v404_v32, 0.0 }
  0x81   : > { %692 = vrcp.f32 %v319_v8 }
  0x82   : > { %694 = vrcp.f32 %v333_v9  ;;  %v445_v9 = vadd.f32 %v444_v5, %v443_v3 }
  0x89   : > { %v689_v19 = vpop.eup %688 }
  0x8a   : > { %v691_v20 = vpop.eup %690  ;;  %v338_v21 = vmul.f32 2.0, %v689_v19 }
  0x8b   : > { %v693_v22 = vpop.eup %692  ;;  %v340_v23 = vmul.f32 2.0, %v691_v20 }
  0x8c   : > { %v695_v24 = vpop.eup %694  ;;  %v339_v25 = vmul.f32 2.0, %v693_v22 }
  0x8d   : > { %v341_v26 = vmul.f32 2.0, %v695_v24 }
  0x8e   : > { %v346_v30 = vcombine.low %v338_v21, %v339_v25 }
  0x8f   : > { %v347_v33 = vcombine.low %v340_v23, %v341_v26 }
  0x90   : > { %v350_v34 = vmul.f32 %v990_v39, %v346_v30 }
  0x91   : > { %v351_v36 = vmul.f32 %v992_v40, %v347_v33 }
  0x92   : > { %v613_v43 = vadd.f32 -1.0, %v350_v34 }
  0x93   : > { %v614_v45 = vadd.f32 -1.0, %v351_v36 }
  0x94   : > { %v418_v46 = vmul.f32 %v613_v43, %v414_v35  ;;  %v452_v48 = vmul.f32 %v613_v43, %v613_v43 }
  0x95   : > { %v419_v49 = vmul.f32 %v614_v45, %v415_v37  ;;  %v453_v39 = vmul.f32 %v614_v45, %v614_v45 }
  0x96   : > { %v422_v50 = vcombine.high %v418_v46, %v418_v46  ;;  %v426_v40 = vsel %vm257_vm1, %v418_v46, 0.0  ;;  %v462_v51 = vmul.f32 %v458_v44, %v452_v48 }
  0x97   : > { %v423_v52 = vcombine.high %v419_v49, %v419_v49  ;;  %v463_v55 = vmul.f32 %v453_v39, %v415_v37  ;;  %v429_v57 = vsel %vm257_vm1, %v419_v49, 0.0 }
  0x98   : > { %v427_v56 = vsel %vm257_vm1, %v422_v50, 0.0  ;;  %v466_v58 = vcombine.high %v462_v51, %v462_v51  ;;  %v470_v59 = vsel %vm257_vm1, %v462_v51, 0.0 }
  0x99   : > { %v428_v60 = vadd.f32 %v427_v56, %v426_v40  ;;  %v467_v61 = vcombine.high %v463_v55, %v463_v55  ;;  %v431_v62 = vsel %vm257_vm1, %v423_v52, 0.0  ;;  %v473_v1 = vsel %vm257_vm1, %v463_v55, 0.0 }
  0x9a   : > { %v471_v63 = vsel %vm257_vm1, %v466_v58, 0.0 }
  0x9b   : > { %v430_v2 = vadd.f32 %v429_v57, %v428_v60  ;;  %v472_v4 = vadd.f32 %v471_v63, %v470_v59  ;;  %v475_v6 = vsel %vm257_vm1, %v467_v61, 0.0 }
  0x9d   : > { %v432_v7 = vadd.f32 %v431_v62, %v430_v2  ;;  %v474_v8 = vadd.f32 %v473_v1, %v472_v4 }
  0x9f   : > { %433 = vadd.xlane.f32.xlu0 %v432_v7  ;;  %v476_v10 = vadd.f32 %v475_v6, %v474_v8 }
  0xa1   : > { %477 = vadd.xlane.f32.xlu1 %v476_v10 }
  0xa3   : > { %446 = vadd.xlane.f32.xlu0 %v445_v9 }
 0x12c   : > { %v434_v12 = vpop.xlane.xlu0 %433 }
 0x12d   : > { %v435_v13 = vadd.f32 %v434_v12, %v409_v11 }
 0x12e   : > { %v478_v17 = vpop.xlane.xlu1 %477 }
 0x12f   : > { %437 = vst.msk [vmem:[%s982_s27] sm:$0xf] %vm436_vm6, %v435_v13 }
 0x130   : > { %v447_v14 = vpop.xlane.xlu0 %446 }
 0x136   : > { %v438_v15 = vld [vmem:[%s982_s27] sm:$0xf] }
 0x137   : > { %v448_v16 = vadd.f32 %v447_v14, %v438_v15 }
 0x139   : > { %450 = vst.msk [vmem:[%s982_s27] sm:$0xf] %vm449_vm7, %v448_v16 }
 0x140   : > { %v451_v18 = vld [vmem:[%s982_s27] sm:$0xf] }
 0x141   : > { %v479_v19 = vadd.f32 %v478_v17, %v451_v18 }
 0x143   : > { %481 = vst.msk [vmem:[%s982_s27] sm:$0xf] %vm480_vm8, %v479_v19 }
 0x144 PF: > { %s18_s14 = sadd.s32 1, %s810_s14   ;;  %s1061_s9 = smov %s794_s10 }
 0x145   : > { %p15_p9 = scmp.ge.s32.totalorder %s18_s14, 4   ;;  %s1062_s10 = smov %s798_s11 }
 0x146   : > { %s1063_s11 = smov %s881_s21  ;;  %s1064_s12 = smov %s806_s13 }
 0x147   : > { %s1065_s13 = smov %s1067_s16  ;;  %17 = sbr.rel (!%p15_p9) target bundleno = 6 (0x6), region = 85 }
 0x14e   :  { %507 = vsyncpa [#allocation3], 1 }
 0x14f   :  { %509 = vsyncpa [#allocation3 + $0x1], 1 }
 0x150   :  { %510 = vsyncpa [#allocation5], 1 }
 0x151   :  { %512 = vsyncpa [#allocation5 + $0x1], 1 }

</bundles_post_ra>
